<compile_context>
chip_gen: v6e
topology: v6e:2x2x1
jax: 0.10.0
libtpu: 0.0.40
codegen_flags: <defaults>
</compile_context>

<pallas_src>
import functools

import jax
import jax.numpy as jnp
from jax.experimental import pallas as pl
from jax.experimental.pallas import tpu as pltpu


def _round_up(x, m):
    return (x + m - 1) // m * m


def _block_diag(w):
    """(C, In, Out) per-channel weights -> (C*In, C*Out) block-diagonal matrix."""
    C, In, Out = w.shape
    eye = jnp.eye(C, dtype=w.dtype)
    return jnp.einsum("cio,cd->cido", w, eye).reshape(C * In, C * Out)


# ----------------------------------------------------------------------------
# Fused decoder kernel: all layers in one body, activation resident on-core.
# ----------------------------------------------------------------------------
def _fused_decoder_kernel(x_ref, *refs, n_layers):
    # refs = (w0, b0, w1, b1, ..., o_ref)
    o_ref = refs[-1]
    prm = refs[:-1]
    h = x_ref[...]  # (Bt, C*In0), f32
    for i in range(n_layers):
        w = prm[2 * i][...]        # (K_i, N_i) block-diagonal (BN pre-folded)
        b = prm[2 * i + 1][...]    # (1, N_i)
        h = jnp.dot(h, w, preferred_element_type=jnp.float32) + b
        if i != n_layers - 1:
            h = jnp.tanh(h)        # EUP; dropout is identity in eval mode
    o_ref[...] = h.astype(o_ref.dtype)


# ----------------------------------------------------------------------------
# Wrapper: BN folding, block-diagonalization, padding, single pallas_call
# ----------------------------------------------------------------------------
def decoder_forward(x, params, *, batchnorm, eps=1e-5):
    """x: (batch, n_features, layersizes[0]) -> (batch, n_features, seq_len)."""
    B, C, In0 = x.shape
    n_layers = len(params)
    seq_len = params[-1]["w"].shape[-1]

    # Fold eval-mode BN into linear params (in f32), build block-diagonal weights.
    flat_w, flat_b = [], []
    for i, p in enumerate(params):
        is_last = i == n_layers - 1
        w = p["w"].astype(jnp.float32)            # (C, In, Out)
        b = p["b"].astype(jnp.float32)[:, 0, :]   # (C, Out)
        if batchnorm and not is_last:
            inv = (p["gamma"] / jnp.sqrt(p["rvar"] + eps)).astype(jnp.float32)
            shift = (p["beta"] - p["rmean"] * inv).astype(jnp.float32)
            w = w * inv[:, None, None]
            b = b * inv[:, None] + shift[:, None]
        w_bd = _block_diag(w)            # (C*In, C*Out)
        b_bd = b.reshape(1, -1)          # (1, C*Out)
        if is_last:
            # Pad final output to a 128-lane multiple for lane-dense stores.
            n = w_bd.shape[-1]
            n_pad = _round_up(max(n, 128), 128)
            if n_pad != n:
                w_bd = jnp.pad(w_bd, ((0, 0), (0, n_pad - n)))
                b_bd = jnp.pad(b_bd, ((0, 0), (0, n_pad - n)))
        flat_w.append(w_bd)
        flat_b.append(b_bd)

    K0 = C * In0
    N_out = flat_w[-1].shape[-1]

    # Batch padding / tiling (sublane multiple of 8; tile 128 for large batches).
    B_pad = _round_up(B, 8)
    if B_pad <= 128:
        Bt = B_pad
    else:
        B_pad = _round_up(B, 128)
        Bt = 128
    nb = B_pad // Bt

    x_flat = x.reshape(B, K0).astype(jnp.float32)   # contiguous reshape, no relayout
    if B_pad != B:
        x_flat = jnp.pad(x_flat, ((0, B_pad - B), (0, 0)))

    in_specs = [pl.BlockSpec((Bt, K0), lambda b: (b, 0))]
    flat_params = []
    for w_bd, b_bd in zip(flat_w, flat_b):
        # Full-array blocks with a constant index_map -> weights stay VMEM-resident.
        in_specs.append(pl.BlockSpec(w_bd.shape, lambda b: (0, 0)))
        in_specs.append(pl.BlockSpec(b_bd.shape, lambda b: (0, 0)))
        flat_params.extend([w_bd, b_bd])

    out = pl.pallas_call(
        functools.partial(_fused_decoder_kernel, n_layers=n_layers),
        out_shape=jax.ShapeDtypeStruct((B_pad, N_out), jnp.float32),
        grid=(nb,),
        in_specs=in_specs,
        out_specs=pl.BlockSpec((Bt, N_out), lambda b: (b, 0)),
        compiler_params=pltpu.CompilerParams(
            dimension_semantics=("parallel",),
        ),
    )(x_flat, *flat_params)

    out = out[:B, : C * seq_len].reshape(B, C, seq_len)
    return out.astype(x.dtype)


# ----------------------------------------------------------------------------
# Pure-JAX reference (for correctness check)
# ----------------------------------------------------------------------------
def decoder_ref(x, params, *, batchnorm, eps=1e-5):
    h = x  # (B, C, In)
    n_layers = len(params)
    for i, p in enumerate(params):
        is_last = i == n_layers - 1
        h = jnp.einsum("bci,cio->bco", h, p["w"]) + p["b"][None, :, 0, :]
        if batchnorm and not is_last:
            inv = p["gamma"] / jnp.sqrt(p["rvar"] + eps)
            h = (h - p["rmean"][None, :, None]) * inv[None, :, None] + p["beta"][None, :, None]
        if not is_last:
            h = jnp.tanh(h)  # dropout = identity (eval)
    return h


# ----------------------------------------------------------------------------
# Deterministic parameter construction (mirrors _Decoder.__init__ shapes)
# ----------------------------------------------------------------------------
def make_decoder_params(key, seq_len, n_features, layersizes):
    sizes = list(layersizes) + [seq_len]
    params = []
    for i in range(len(sizes) - 1):
        in_f, out_f = sizes[i], sizes[i + 1]
        key, kw, kb, kg, kbe, km, kv = jax.random.split(key, 7)
        p = {
            # IndependentChannelLinear: one (in_f, out_f) weight per channel.
            "w": 0.1 * jax.random.normal(kw, (n_features, in_f, out_f), jnp.float32),
            "b": 0.1 * jax.random.normal(kb, (n_features, 1, out_f), jnp.float32),
            # BatchNorm1d(n_features) params + running stats (hidden layers only).
            "gamma": 1.0 + 0.1 * jax.random.normal(kg, (n_features,), jnp.float32),
            "beta": 0.1 * jax.random.normal(kbe, (n_features,), jnp.float32),
            "rmean": 0.05 * jax.random.normal(km, (n_features,), jnp.float32),
            "rvar": 0.5 + jnp.abs(jax.random.normal(kv, (n_features,), jnp.float32)),
        }
        params.append(p)
    return params


if __name__ == "__main__":
    # Small config consistent with the module: decoder goes latent -> ... -> seq_len.
    batch = 2
    n_features = 4
    seq_len = 8
    layersizes = [16, 32]   # decoder layer sizes; final ICLinear maps 32 -> seq_len
    dropout_p = 0.25        # identity in eval mode
    batchnorm = True

    key = jax.random.PRNGKey(0)
    key, kx = jax.random.split(key)
    # Decoder input: (batch, n_features, layersizes[0])
    x = jax.random.normal(kx, (batch, n_features, layersizes[0]), jnp.float32)
    params = make_decoder_params(key, seq_len, n_features, layersizes)

    out = decoder_forward(x, params, batchnorm=batchnorm)
    out = jax.block_until_ready(out)

    ref = decoder_ref(x, params, batchnorm=batchnorm)
    assert out.shape == (batch, n_features, seq_len), out.shape
    assert jnp.allclose(out, ref, atol=1e-5, rtol=1e-5), float(jnp.max(jnp.abs(out - ref)))

    print("KERNEL_OK")
</pallas_src>

<mosaic_0001>
module attributes {stable_mosaic.version = 11 : i64} {
  func.func @_fused_decoder_kernel(%arg0: i32, %arg1: memref<8x64xf32, #tpu.memory_space<vmem>>, %arg2: memref<64x128xf32, #tpu.memory_space<vmem>>, %arg3: memref<1x128xf32, #tpu.memory_space<vmem>>, %arg4: memref<128x128xf32, #tpu.memory_space<vmem>>, %arg5: memref<1x128xf32, #tpu.memory_space<vmem>>, %arg6: memref<8x128xf32, #tpu.memory_space<vmem>>) attributes {dimension_semantics = [#tpu.dimension_semantics<parallel>], iteration_bounds = array<i64: 1>, scalar_prefetch = 0 : i64, scratch_operands = 0 : i64, tpu.core_type = #tpu.core_type<tc>, window_params = [{transform_indices = @transform_0, window_bounds = array<i64: 8, 64>}, {pipeline_mode = #tpu.pipeline_mode<synchronous>, transform_indices = @transform_1, window_bounds = array<i64: 64, 128>}, {pipeline_mode = #tpu.pipeline_mode<synchronous>, transform_indices = @transform_2, window_bounds = array<i64: 1, 128>}, {pipeline_mode = #tpu.pipeline_mode<synchronous>, transform_indices = @transform_3, window_bounds = array<i64: 128, 128>}, {pipeline_mode = #tpu.pipeline_mode<synchronous>, transform_indices = @transform_4, window_bounds = array<i64: 1, 128>}, {transform_indices = @transform_5, window_bounds = array<i64: 8, 128>}]} {
    %c0 = arith.constant 0 : index
    %c0_0 = arith.constant 0 : index
    %0 = vector.load %arg1[%c0, %c0_0] : memref<8x64xf32, #tpu.memory_space<vmem>>, vector<8x64xf32>
    %c0_1 = arith.constant 0 : index
    %c0_2 = arith.constant 0 : index
    %1 = vector.load %arg2[%c0_1, %c0_2] : memref<64x128xf32, #tpu.memory_space<vmem>>, vector<64x128xf32>
    %c0_3 = arith.constant 0 : index
    %c0_4 = arith.constant 0 : index
    %2 = vector.load %arg3[%c0_3, %c0_4] : memref<1x128xf32, #tpu.memory_space<vmem>>, vector<1x128xf32>
    %cst = arith.constant dense<0.000000e+00> : vector<8x128xf32>
    %3 = tpu.matmul %0, %1, %cst {dimension_numbers = #tpu.dot_dimension_numbers<[1], [0], [0], [1], [0, 0, 1, 1], [], []>} : vector<8x64xf32>, vector<64x128xf32>, vector<8x128xf32> -> vector<8x128xf32>
    %4 = vector.broadcast %2 : vector<1x128xf32> to vector<8x128xf32>
    %5 = arith.addf %3, %4 : vector<8x128xf32>
    %6 = math.tanh %5 : vector<8x128xf32>
    %c0_5 = arith.constant 0 : index
    %c0_6 = arith.constant 0 : index
    %7 = vector.load %arg4[%c0_5, %c0_6] : memref<128x128xf32, #tpu.memory_space<vmem>>, vector<128x128xf32>
    %c0_7 = arith.constant 0 : index
    %c0_8 = arith.constant 0 : index
    %8 = vector.load %arg5[%c0_7, %c0_8] : memref<1x128xf32, #tpu.memory_space<vmem>>, vector<1x128xf32>
    %cst_9 = arith.constant dense<0.000000e+00> : vector<8x128xf32>
    %9 = tpu.matmul %6, %7, %cst_9 {dimension_numbers = #tpu.dot_dimension_numbers<[1], [0], [0], [1], [0, 0, 1, 1], [], []>} : vector<8x128xf32>, vector<128x128xf32>, vector<8x128xf32> -> vector<8x128xf32>
    %10 = vector.broadcast %8 : vector<1x128xf32> to vector<8x128xf32>
    %11 = arith.addf %9, %10 : vector<8x128xf32>
    %c0_10 = arith.constant 0 : index
    %c0_11 = arith.constant 0 : index
    %12 = vector.load %arg6[%c0_10, %c0_11] : memref<8x128xf32, #tpu.memory_space<vmem>>, vector<8x128xf32>
    tpu.vector_store %arg6[%c0_10, %c0_11], %11 {strides = array<i32>} : memref<8x128xf32, #tpu.memory_space<vmem>>, vector<8x128xf32>,
    return
  }
  func.func @transform_0(%arg0: i32) -> (i32, i32) {
    %c0_i32 = arith.constant 0 : i32
    %c0_i32_0 = arith.constant 0 : i32
    return %arg0, %c0_i32 : i32, i32
  }
  func.func @transform_1(%arg0: i32) -> (i32, i32) {
    %c0_i32 = arith.constant 0 : i32
    %c0_i32_0 = arith.constant 0 : i32
    %c0_i32_1 = arith.constant 0 : i32
    return %c0_i32, %c0_i32_0 : i32, i32
  }
  func.func @transform_2(%arg0: i32) -> (i32, i32) {
    %c0_i32 = arith.constant 0 : i32
    %c0_i32_0 = arith.constant 0 : i32
    %c0_i32_1 = arith.constant 0 : i32
    return %c0_i32, %c0_i32_0 : i32, i32
  }
  func.func @transform_3(%arg0: i32) -> (i32, i32) {
    %c0_i32 = arith.constant 0 : i32
    %c0_i32_0 = arith.constant 0 : i32
    %c0_i32_1 = arith.constant 0 : i32
    return %c0_i32, %c0_i32_0 : i32, i32
  }
  func.func @transform_4(%arg0: i32) -> (i32, i32) {
    %c0_i32 = arith.constant 0 : i32
    %c0_i32_0 = arith.constant 0 : i32
    %c0_i32_1 = arith.constant 0 : i32
    return %c0_i32, %c0_i32_0 : i32, i32
  }
  func.func @transform_5(%arg0: i32) -> (i32, i32) {
    %c0_i32 = arith.constant 0 : i32
    %c0_i32_0 = arith.constant 0 : i32
    return %arg0, %c0_i32 : i32, i32
  }
}

</mosaic_0001>

<bundles_post_ra>
// kernel: tpu_custom_call.1
= control target key start
LH: loop header
LB: loop body
LE: loop exit
PB: predicated region body
PF: predicated region fallthrough
CT: control target
= control target key end

     0   :  { %10 = vsyncpa [#allocation3], 0  ;;  %s522_s0 = inlined_call_operand.hbm [shape: f32[8,64], index: 0, kind: input, shape index: {}]   ;;  %s523_s1 = inlined_call_operand.hbm [shape: f32[64,128], index: 1, kind: input, shape index: {}]   ;;  %s524_s2 = inlined_call_operand.vmem [shape: f32[1,128], index: 2, kind: input, shape index: {}]   ;;  %s525_s3 = inlined_call_operand.hbm [shape: f32[128,128], index: 3, kind: input, shape index: {}]   ;;  %s526_s4 = inlined_call_operand.vmem [shape: f32[1,128], index: 4, kind: input, shape index: {}]   ;;  %s527_s5 = inlined_call_operand.hbm [shape: f32[8,128], index: 5, kind: output, shape index: {}]  }
   0x1   :  { %11 = vsyncpa [#allocation6], 0 }
   0x2   :  { %12 = vsyncpa [#allocation4], 0  ;;  %s440_s18 = smov [#allocation5]  }
   0x3   :  { %s28_s19 = sshll.u32 %s440_s18, 4  ;;  %s29_s19 = int_to_ptr.vmem [resolvable:$true] %s28_s19 }
   0x4   :  { %s362_s20 = scalar_lea.vmem %s29_s19, 1024  ;;  %p367_p1 = scmp.lt.s32.totalorder %s29_s19, %s29_s19 }
   0x5   :  { %p363_p0 = scmp.ne.s32.totalorder %s29_s19, %s362_s20  ;;  %p368_p2 = scmp.lt.s32.totalorder %s362_s20, %s362_s20 }
   0x7   :  { %p369_p3 = por %p368_p2, %p367_p1 }
   0x9   :  { %p370_p4 = pnand %p369_p3, %p363_p0 }
   0xb   :  { %373 = shalt.err (!%p370_p4)
}
   0xc   :  { %s441_s21 = smov 128   ;;  %s442_s22 = smov 8  }
   0xd   :  { %34 = dma.hbm_to_vmem [thread:$0]  %s523_s1, 1024, %s29_s19, [#allocation6], %s441_s21, %s441_s21, %s442_s22  }
   0xe   :  { %s443_s25 = smov [#allocation2]   ;;  %s444_s27 = smov [#allocation7]  }
   0xf   :  { %s19_s26 = sshll.u32 %s443_s25, 4  ;;  %s42_s28 = sshll.u32 %s444_s27, 4  ;;  %s20_s26 = int_to_ptr.vmem [resolvable:$true] %s19_s26  ;;  %s43_s28 = int_to_ptr.vmem [resolvable:$true] %s42_s28 }
  0x10   :  { %s382_s29 = scalar_lea.vmem %s20_s26, 128  ;;  %p387_p6 = scmp.lt.s32.totalorder %s20_s26, %s20_s26 }
  0x11   :  { %p383_p5 = scmp.ne.s32.totalorder %s20_s26, %s382_s29  ;;  %p388_p7 = scmp.lt.s32.totalorder %s382_s29, %s382_s29 }
  0x13   :  { %p389_p8 = por %p388_p7, %p387_p6 }
  0x15   :  { %p390_p9 = pnand %p389_p8, %p383_p5 }
  0x17   :  { %393 = shalt.err (!%p390_p9)
}
  0x18   :  { %22 = dma.hbm_to_vmem [thread:$0]  %s522_s0, 128, %s20_s26, [#allocation3]  }
  0x19   :  { %s402_s7 = scalar_lea.vmem %s43_s28, 2048  ;;  %p407_p11 = scmp.lt.s32.totalorder %s43_s28, %s43_s28 }
  0x1a   :  { %p403_p10 = scmp.ne.s32.totalorder %s43_s28, %s402_s7  ;;  %p408_p12 = scmp.lt.s32.totalorder %s402_s7, %s402_s7 }
  0x1c   :  { %p409_p13 = por %p408_p12, %p407_p11 }
  0x1e   :  { %p410_p0 = pnand %p409_p13, %p403_p10 }
  0x20   :  { %413 = shalt.err (!%p410_p0)
}
  0x21   :  { %48 = dma.hbm_to_vmem [thread:$0]  %s525_s3, 2048, %s43_s28, [#allocation6], %s441_s21, %s441_s21, %s442_s22  }
  0x22   :  { %434 = dma.done.wait [#allocation3], 128  }
  0x23   :  { %435 = vsyncadd [#allocation3], 4294967168 }
  0x24   :  { %436 = dma.done.wait [#allocation6], 3072  }
  0x25   :  { %437 = vsyncadd [#allocation6], 4294964224  ;;  %v445_v0 = vmov 0.0   ;;  %vm446_vm0 = vmmov 0   ;;  %v68_v1 = vld [vmem:[#allocation5 + $0x38] sm:$0xff]  ;;  %v67_v2 = vld [vmem:[#allocation5 + $0x30] sm:$0xff] }
  0x26   :  { %290 = vmatprep.subr.mxu0 %v445_v0  ;;  %306 = vmatprep.mubr.msk.f32.mxu0 %vm446_vm0, %v445_v0  ;;  %v66_v3 = vld [vmem:[#allocation5 + $0x28] sm:$0xff]  ;;  %v166_v4 = vld [vmem:[#allocation7 + $0x78] sm:$0xff]  ;;  %v165_v5 = vld [vmem:[#allocation7 + $0x70] sm:$0xff]  ;;  %vm76_vm1 = vcmask 523264   ;;  %s447_s11 = smov [#allocation8]  }
  0x27   :  { %309 = vmatprep.subr.mxu1 %v445_v0  ;;  %341 = vmatprep.mubr.msk.f32.mxu1 %vm446_vm0, %v445_v0  ;;  %v65_v6 = vld [vmem:[#allocation5 + $0x20] sm:$0xff]  ;;  %v164_v7 = vld [vmem:[#allocation7 + $0x68] sm:$0xff]  ;;  %v64_v8 = vld [vmem:[#allocation5 + $0x18] sm:$0xff]  ;;  %s251_s12 = sshll.u32 %s447_s11, 4  ;;  %s252_s12 = int_to_ptr.vmem [resolvable:$true] %s251_s12 }
  0x28   :  { %291 = vmatpush3.msra.mxu0 %v68_v1  ;;  %310 = vmatpush3.msra.mxu1 %v166_v4  ;;  %v163_v9 = vld [vmem:[#allocation7 + $0x60] sm:$0xff]  ;;  %v63_v10 = vld [vmem:[#allocation5 + $0x10] sm:$0xff]  ;;  %v162_v11 = vld [vmem:[#allocation7 + $0x58] sm:$0xff]  ;;  %s414_s13 = scalar_lea.vmem %s252_s12, 128  ;;  %p419_p2 = scmp.lt.s32.totalorder %s252_s12, %s252_s12 }
  0x29   :  { %292 = vmatprep.subr.mxu0 %v445_v0  ;;  %311 = vmatprep.subr.mxu1 %v445_v0  ;;  %v62_v12 = vld [vmem:[#allocation5 + $0x8] sm:$0xff]  ;;  %v161_v13 = vld [vmem:[#allocation7 + $0x50] sm:$0xff]  ;;  %v61_v14 = vld [vmem:[#allocation5] sm:$0xff]  ;;  %p415_p1 = scmp.ne.s32.totalorder %s252_s12, %s414_s13  ;;  %p420_p3 = scmp.lt.s32.totalorder %s414_s13, %s414_s13 }
  0x2a   :  { %293 = vmatpush3.msra.mxu0 %v67_v2  ;;  %312 = vmatpush3.msra.mxu1 %v165_v5  ;;  %v60_v15 = vld [vmem:[#allocation2] sm:$0xff]  ;;  %v160_v16 = vld [vmem:[#allocation7 + $0x48] sm:$0xff]  ;;  %v159_v17 = vld [vmem:[#allocation7 + $0x40] sm:$0xff] }
  0x2b   :  { %294 = vmatprep.subr.mxu0 %v445_v0  ;;  %313 = vmatprep.subr.mxu1 %v445_v0  ;;  %v158_v18 = vld [vmem:[#allocation7 + $0x38] sm:$0xff]  ;;  %v157_v19 = vld [vmem:[#allocation7 + $0x30] sm:$0xff]  ;;  %v156_v20 = vld [vmem:[#allocation7 + $0x28] sm:$0xff]  ;;  %p421_p4 = por %p420_p3, %p419_p2 }
  0x2c   :  { %295 = vmatpush3.msra.mxu0 %v66_v3  ;;  %314 = vmatpush3.msra.mxu1 %v164_v7  ;;  %v155_v21 = vld [vmem:[#allocation7 + $0x20] sm:$0xff]  ;;  %v154_v22 = vld [vmem:[#allocation7 + $0x18] sm:$0xff]  ;;  %v153_v23 = vld [vmem:[#allocation7 + $0x10] sm:$0xff] }
  0x2d   :  { %296 = vmatprep.subr.mxu0 %v445_v0  ;;  %315 = vmatprep.subr.mxu1 %v445_v0  ;;  %v152_v24 = vld [vmem:[#allocation7 + $0x8] sm:$0xff]  ;;  %v151_v25 = vld [vmem:[#allocation7] sm:$0xff]  ;;  %v261_v26 = vld [vmem:[%s524_s2] ss:$0 sm:$0xff]  ;;  %p422_p5 = pnand %p421_p4, %p415_p1 }
  0x2e   :  { %297 = vmatpush3.msra.mxu0 %v65_v6  ;;  %316 = vmatpush3.msra.mxu1 %v163_v9  ;;  %v263_v31 = vld [vmem:[%s526_s4] ss:$0 sm:$0xff] }
  0x2f   :  { %298 = vmatprep.subr.mxu0 %v445_v0  ;;  %317 = vmatprep.subr.mxu1 %v445_v0 }
  0x30   :  { %299 = vmatpush3.msra.mxu0 %v64_v8  ;;  %318 = vmatpush3.msra.mxu1 %v162_v11 }
  0x31   :  { %300 = vmatprep.subr.mxu0 %v445_v0  ;;  %319 = vmatprep.subr.mxu1 %v445_v0 }
  0x32   :  { %301 = vmatpush3.msra.mxu0 %v63_v10  ;;  %320 = vmatpush3.msra.mxu1 %v161_v13 }
  0x33   :  { %302 = vmatprep.subr.mxu0 %v445_v0  ;;  %321 = vmatprep.subr.mxu1 %v445_v0 }
  0x34   :  { %303 = vmatpush3.msra.mxu0 %v62_v12  ;;  %322 = vmatpush3.msra.mxu1 %v160_v16 }
  0x35   :  { %304 = vmatprep.subr.mxu0 %v445_v0  ;;  %323 = vmatprep.subr.mxu1 %v445_v0 }
  0x36   :  { %305 = vmatpush3.msra.mxu0 %v61_v14  ;;  %324 = vmatpush3.msra.mxu1 %v159_v17 }
  0x37   :  { %307 = vmatmul.mubr.msk.f32.vlgmr.msra.gmra.mxu0 %vm76_vm1, %v60_v15  ;;  %325 = vmatprep.subr.mxu1 %v445_v0 }
  0x38   :  { %326 = vmatpush3.msra.mxu1 %v158_v18 }
  0x39   :  { %327 = vmatprep.subr.mxu1 %v445_v0 }
  0x3a   :  { %328 = vmatpush3.msra.mxu1 %v157_v19 }
  0x3b   :  { %329 = vmatprep.subr.mxu1 %v445_v0 }
  0x3c   :  { %330 = vmatpush3.msra.mxu1 %v156_v20 }
  0x3d   :  { %331 = vmatprep.subr.mxu1 %v445_v0 }
  0x3e   :  { %332 = vmatpush3.msra.mxu1 %v155_v21 }
  0x3f   :  { %333 = vmatprep.subr.mxu1 %v445_v0 }
  0x40   :  { %334 = vmatpush3.msra.mxu1 %v154_v22 }
  0x41   :  { %335 = vmatprep.subr.mxu1 %v445_v0 }
  0x42   :  { %336 = vmatpush3.msra.mxu1 %v153_v23 }
  0x43   :  { %337 = vmatprep.subr.mxu1 %v445_v0 }
  0x44   :  { %338 = vmatpush3.msra.mxu1 %v152_v24 }
  0x45   :  { %339 = vmatprep.subr.mxu1 %v445_v0 }
  0x46   :  { %340 = vmatpush3.msra.mxu1 %v151_v25 }
  0xf7   :  { %v146_v27 = vpop.f32.mrf.mxu0 }
  0xf8   :  { %v147_v28 = vadd.f32 %v261_v26, %v146_v27 }
  0xf9   :  { %v308_v29 = vpop.f32.mrf.mxu0 }
  0xfa   :  { %352 = vtanh.f32 %v147_v28 }
 0x107   :  { %v353_v30 = vpop.eup %352 }
 0x108   :  { %342 = vmatmul.mubr.f32.vlgmr.msra.gmra.mxu1 %v353_v30 }
 0x1c8   :  { %v240_v32 = vpop.f32.mrf.mxu1 }
 0x1c9   :  { %v241_v33 = vadd.f32 %v263_v31, %v240_v32 }
 0x1ca   :  { %v343_v34 = vpop.f32.mrf.mxu1 }
 0x1cb   :  { %244 = vst [vmem:[#allocation8] sm:$0xff] %v241_v33 }
 0x1cc   :  { %425 = shalt.err (!%p422_p5)
}
 0x1cd   :  { %254 = dma.vmem_to_hbm [thread:$0]  %s252_s12, 128, %s527_s5, [#allocation4]  }
 0x1ce   :  { %438 = dma.done.wait [#allocation4], 128  }
 0x1cf   :  { %439 = vsyncadd [#allocation4], 4294967168 }
 0x1d0   :  { %258 = vsyncpa [#allocation3], 1 }
 0x1d1   :  { %259 = vsyncpa [#allocation6], 1 }
 0x1d2   :  { %260 = vsyncpa [#allocation4], 1 }

</bundles_post_ra>
